<compile_context>
chip_gen: v6e
topology: v6e:2x2x1
jax: 0.10.0
libtpu: 0.0.40
codegen_flags: <defaults>
</compile_context>

<pallas_src>
import functools

import jax
import jax.numpy as jnp
from jax.experimental import pallas as pl
from jax.experimental.pallas import tpu as pltpu


def logistic_regression_kernel(x_ref, w_ref, b_ref, o_ref):
    # x_ref: (TB, F), w_ref: (F, O), b_ref: (1, O), o_ref: (TB, O)
    acc = jnp.dot(x_ref[...], w_ref[...], preferred_element_type=jnp.float32)
    # Fused bias add + sigmoid epilogue (exp lowers to the EUP slot).
    o_ref[...] = jax.nn.sigmoid(acc + b_ref[...]).astype(o_ref.dtype)


@functools.partial(jax.jit, static_argnames=("block_batch",))
def logistic_regression_forward(x, w_t, b2d, *, block_batch=512):
    """Forward pass: sigmoid(x @ w_t + b).

    x:   (B, F) float32
    w_t: (F, O) float32  -- weight already transposed at model setup
    b2d: (1, O) float32  -- bias reshaped at model setup
    """
    B, F = x.shape
    _, O = w_t.shape

    # Batch tile: full extent if the batch is small, otherwise a large
    # multiple-of-8 tile that double-buffers comfortably inside the scoped
    # VMEM budget on every generation (v7x's 64 MiB included).
    if B <= block_batch:
        TB = B                      # full-extent block -> always layout-legal
    else:
        TB = block_batch            # multiple of 8 by construction

    grid = (pl.cdiv(B, TB),)

    return pl.pallas_call(
        logistic_regression_kernel,
        out_shape=jax.ShapeDtypeStruct((B, O), x.dtype),
        grid_spec=pl.GridSpec(
            grid=grid,
            in_specs=[
                pl.BlockSpec((TB, F), lambda i: (i, 0)),   # x: tiled over batch
                pl.BlockSpec((F, O), lambda i: (0, 0)),    # W: resident
                pl.BlockSpec((1, O), lambda i: (0, 0)),    # b: resident
            ],
            out_specs=pl.BlockSpec((TB, O), lambda i: (i, 0)),
        ),
        compiler_params=pltpu.CompilerParams(
            dimension_semantics=("parallel",),
        ),
    )(x, w_t, b2d)


def make_params(key, input_dim, output_dim):
    """Deterministic nn.Linear-style parameters, pre-laid-out for the kernel."""
    kw, kb = jax.random.split(key, 2)
    weight = jax.random.normal(kw, (output_dim, input_dim), jnp.float32) * 0.1
    bias = jax.random.normal(kb, (output_dim,), jnp.float32) * 0.1
    # Hoisted layout work (done once at setup, not per forward call):
    w_t = weight.T.copy()            # (F, O)
    b2d = bias.reshape(1, output_dim)
    return weight, bias, w_t, b2d


if __name__ == "__main__":
    key = jax.random.PRNGKey(0)
    kx, kp = jax.random.split(key, 2)

    batch = 8
    input_dim = 32
    output_dim = 2

    x = jax.random.normal(kx, (batch, input_dim), dtype=jnp.float32)
    weight, bias, w_t, b2d = make_params(kp, input_dim, output_dim)

    out = logistic_regression_forward(x, w_t, b2d)
    out = jax.block_until_ready(out)

    # Reference: same math as torch.nn.Linear + torch.nn.Sigmoid.
    ref = jax.nn.sigmoid(x @ weight.T + bias)
    assert out.shape == (batch, output_dim)
    assert jnp.allclose(out, ref, atol=1e-5, rtol=1e-5)

    print("KERNEL_OK")
</pallas_src>

<mosaic_0001>
module attributes {stable_mosaic.version = 11 : i64} {
  func.func @logistic_regression_kernel(%arg0: i32, %arg1: memref<8x32xf32, #tpu.memory_space<vmem>>, %arg2: memref<32x2xf32, #tpu.memory_space<vmem>>, %arg3: memref<1x2xf32, #tpu.memory_space<vmem>>, %arg4: memref<8x2xf32, #tpu.memory_space<vmem>>) attributes {dimension_semantics = [#tpu.dimension_semantics<parallel>], iteration_bounds = array<i64: 1>, scalar_prefetch = 0 : i64, scratch_operands = 0 : i64, tpu.core_type = #tpu.core_type<tc>, window_params = [{transform_indices = @transform_0, window_bounds = array<i64: 8, 32>}, {pipeline_mode = #tpu.pipeline_mode<synchronous>, transform_indices = @transform_1, window_bounds = array<i64: 32, 2>}, {pipeline_mode = #tpu.pipeline_mode<synchronous>, transform_indices = @transform_2, window_bounds = array<i64: 1, 2>}, {transform_indices = @transform_3, window_bounds = array<i64: 8, 2>}]} {
    %c0 = arith.constant 0 : index
    %c0_0 = arith.constant 0 : index
    %0 = vector.load %arg1[%c0, %c0_0] : memref<8x32xf32, #tpu.memory_space<vmem>>, vector<8x32xf32>
    %c0_1 = arith.constant 0 : index
    %c0_2 = arith.constant 0 : index
    %1 = vector.load %arg2[%c0_1, %c0_2] : memref<32x2xf32, #tpu.memory_space<vmem>>, vector<32x2xf32>
    %cst = arith.constant dense<0.000000e+00> : vector<8x2xf32>
    %2 = tpu.matmul %0, %1, %cst {dimension_numbers = #tpu.dot_dimension_numbers<[1], [0], [0], [1], [0, 0, 1, 1], [], []>} : vector<8x32xf32>, vector<32x2xf32>, vector<8x2xf32> -> vector<8x2xf32>
    %c0_3 = arith.constant 0 : index
    %c0_4 = arith.constant 0 : index
    %3 = vector.load %arg3[%c0_3, %c0_4] : memref<1x2xf32, #tpu.memory_space<vmem>>, vector<1x2xf32>
    %4 = vector.broadcast %3 : vector<1x2xf32> to vector<8x2xf32>
    %5 = arith.addf %2, %4 : vector<8x2xf32>
    %6 = arith.negf %5 : vector<8x2xf32>
    %7 = math.exp %6 : vector<8x2xf32>
    %cst_5 = arith.constant 1.000000e+00 : f32
    %8 = vector.broadcast %cst_5 : f32 to vector<8x2xf32>
    %9 = arith.addf %8, %7 : vector<8x2xf32>
    %10 = arith.divf %8, %9 : vector<8x2xf32>
    %c0_6 = arith.constant 0 : index
    %c0_7 = arith.constant 0 : index
    %11 = vector.load %arg4[%c0_6, %c0_7] : memref<8x2xf32, #tpu.memory_space<vmem>>, vector<8x2xf32>
    tpu.vector_store %arg4[%c0_6, %c0_7], %10 {strides = array<i32>} : memref<8x2xf32, #tpu.memory_space<vmem>>, vector<8x2xf32>,
    return
  }
  func.func @transform_0(%arg0: i32) -> (i32, i32) {
    %c0_i32 = arith.constant 0 : i32
    %c0_i32_0 = arith.constant 0 : i32
    return %arg0, %c0_i32 : i32, i32
  }
  func.func @transform_1(%arg0: i32) -> (i32, i32) {
    %c0_i32 = arith.constant 0 : i32
    %c0_i32_0 = arith.constant 0 : i32
    %c0_i32_1 = arith.constant 0 : i32
    return %c0_i32, %c0_i32_0 : i32, i32
  }
  func.func @transform_2(%arg0: i32) -> (i32, i32) {
    %c0_i32 = arith.constant 0 : i32
    %c0_i32_0 = arith.constant 0 : i32
    %c0_i32_1 = arith.constant 0 : i32
    return %c0_i32, %c0_i32_0 : i32, i32
  }
  func.func @transform_3(%arg0: i32) -> (i32, i32) {
    %c0_i32 = arith.constant 0 : i32
    %c0_i32_0 = arith.constant 0 : i32
    return %arg0, %c0_i32 : i32, i32
  }
}

</mosaic_0001>

<bundles_post_ra>
// kernel: logistic_regression_forward.1
= control target key start
LH: loop header
LB: loop body
LE: loop exit
PB: predicated region body
PF: predicated region fallthrough
CT: control target
= control target key end

     0   :  { %v137_v0 = vmov 0.0   ;;  %vm138_vm0 = vmmov 0   ;;  %vm26_vm1 = vcmask 261120   ;;  %vm106_vm2 = vcmask 15360   ;;  %s180_s1 = inlined_call_operand.vmem [shape: f32[32,2], index: 1, kind: input, shape index: {}]   ;;  %s181_s0 = inlined_call_operand.vmem [shape: f32[8,32], index: 0, kind: input, shape index: {}]   ;;  %s182_s2 = inlined_call_operand.vmem [shape: f32[1,2], index: 2, kind: input, shape index: {}]   ;;  %s183_s3 = inlined_call_operand.vmem [shape: f32[8,2], index: 3, kind: output, shape index: {}]  }
   0x1   :  { %120 = vmatprep.subr.mxu0 %v137_v0  ;;  %v18_v1 = vld [vmem:[%s180_s1 + $0x18] sm:$0xff]  ;;  %v17_v2 = vld [vmem:[%s180_s1 + $0x10] sm:$0xff]  ;;  %128 = vmatprep.mubr.msk.f32.mxu0 %vm138_vm0, %v137_v0  ;;  %v16_v3 = vld [vmem:[%s180_s1 + $0x8] sm:$0xff] }
   0x2   :  { %121 = vmatpush3.msra.mxu0 %v18_v1  ;;  %v15_v4 = vld [vmem:[%s180_s1] sm:$0xff] }
   0x3   :  { %122 = vmatprep.subr.mxu0 %v137_v0  ;;  %v14_v5 = vld [vmem:[%s181_s0] sm:$0xff] }
   0x4   :  { %123 = vmatpush3.msra.mxu0 %v17_v2  ;;  %v112_v6 = vld [vmem:[%s182_s2] ss:$0 sm:$0xff] }
   0x5   :  { %124 = vmatprep.subr.mxu0 %v137_v0 }
   0x6   :  { %125 = vmatpush3.msra.mxu0 %v16_v3 }
   0x7   :  { %126 = vmatprep.subr.mxu0 %v137_v0 }
   0x8   :  { %127 = vmatpush3.msra.mxu0 %v15_v4 }
   0x9   :  { %129 = vmatmul.mubr.msk.f32.vlgmr.msra.gmra.mxu0 %vm26_vm1, %v14_v5 }
  0xc9   :  { %v96_v7 = vpop.f32.mrf.mxu0 }
  0xca   :  { %v97_v8 = vadd.f32 %v112_v6, %v96_v7 }
  0xcb   :  { %v130_v9 = vpop.f32.mrf.mxu0 }
  0xcc   :  { %v114_v10 = vmul.f32 -1.442695, %v97_v8 }
  0xce   :  { %133 = vpow2.f32 %v114_v10 }
  0xdb   :  { %v134_v11 = vpop.eup %133 }
  0xdc   :  { %v103_v12 = vadd.f32 1.0, %v134_v11 }
  0xde   :  { %135 = vrcp.f32 %v103_v12 }
  0xeb   :  { %v136_v13 = vpop.eup %135 }
  0xec   :  { %107 = vst.msk [vmem:[%s183_s3] sm:$0xff] %vm106_vm2, %v136_v13 }

</bundles_post_ra>
